<compile_context>
chip_gen: v5e
topology: v5e:2x2
jax: 0.10.0
libtpu: 0.0.40
codegen_flags: <defaults>
</compile_context>

<pallas_src>
import functools

import jax
import jax.numpy as jnp
import numpy as np
from jax.experimental import pallas as pl
from jax.experimental.pallas import tpu as pltpu

K_NP = np.array(
    [[455.77496337890625, 0.0, 497.1180114746094],
     [0.0, 456.319091796875, 251.58502197265625],
     [0.0, 0.0, 1.0]],
    dtype=np.float32,
)


def _project3d_kernel(p_sm, pts_ref, out_ref, *, inv_w, inv_h, eps):
    # p_sm:    (B, 12) f32 SMEM scalar-prefetch -- flattened 3x4 projection mats
    # pts_ref: (1, 4, TR, 128) f32 VMEM -- homogeneous point tile (x, y, z, w)
    # out_ref: (1, 2, TR, 128) f32 VMEM -- normalized pixel coords (0 = x, 1 = y)
    b = pl.program_id(0)

    # Dense (TR, 128) slabs: pixels live on (sublane, lane), vregs fully used.
    x = pts_ref[0, 0]
    y = pts_ref[0, 1]
    z = pts_ref[0, 2]
    w = pts_ref[0, 3]

    # 12 projection coefficients through the scalar path (free VLIW slot).
    p00 = p_sm[b, 0];  p01 = p_sm[b, 1];  p02 = p_sm[b, 2];  p03 = p_sm[b, 3]
    p10 = p_sm[b, 4];  p11 = p_sm[b, 5];  p12 = p_sm[b, 6];  p13 = p_sm[b, 7]
    p20 = p_sm[b, 8];  p21 = p_sm[b, 9];  p22 = p_sm[b, 10]; p23 = p_sm[b, 11]

    # VPU scalar-broadcast FMAs; only the 3 cam rows we actually need.
    cam_x = p00 * x + p01 * y + p02 * z + p03 * w
    cam_y = p10 * x + p11 * y + p12 * z + p13 * w
    cam_z = p20 * x + p21 * y + p22 * z + p23 * w

    # Exact f32 reciprocal (the approx EUP path was not accurate enough).
    inv = 1.0 / (cam_z + eps)

    # Full-slab, unmasked stores per output channel.
    out_ref[0, 0] = (cam_x * inv * inv_w - 0.5) * 2.0
    out_ref[0, 1] = (cam_y * inv * inv_h - 0.5) * 2.0


def _round_up(x, m):
    return (x + m - 1) // m * m


def _cdiv(a, b):
    return (a + b - 1) // b


def _pick_tile_rows(nr, cap_rows, min_blocks):
    """Rows-of-128-lanes per block: multiple of 8 (or all of NR when NR < 8),
    capped at cap_rows, and small enough to leave >= min_blocks grid steps on
    the row axis when NR permits (keeps both v7x TensorCores busy at B == 1)."""
    if nr < 8:
        return nr
    cap = max(8, cap_rows - cap_rows % 8)
    tr = min(_round_up(nr, 8), cap)
    want = _round_up(max(1, nr // max(1, min_blocks)), 8)
    return max(8, min(tr, want))


def project3d(points, K, T, *, height, width, eps=1e-7, tile_rows=1024,
              channels_last=True):
    """points: (B, 4, H*W) f32; K: (B, 3, 3) f32; T: (B, 4, 4) f32.
    Returns (B, H, W, 2) f32 (PyTorch contract) or (B, 2, H, W) if
    channels_last=False (no extra HBM transpose pass)."""
    B = points.shape[0]
    N = height * width
    assert points.shape == (B, 4, N)

    # Glue: tiny matmul P = K @ T[:, :3, :] -> (B, 3, 4), flattened for SMEM.
    P = jnp.einsum("bij,bjk->bik", K, T[:, :3, :],
                   precision=jax.lax.Precision.HIGHEST).astype(jnp.float32)
    P_flat = P.reshape(B, 12)

    # Pixel axis as rows of 128 lanes.  Free view when N % 128 == 0.
    N_pad = _round_up(N, 128)
    if N_pad != N:
        # TODO(synk): one extra pad pass for awkward N; typical H*W is a
        # multiple of 128 so this rarely triggers.
        pts = jnp.zeros((B, 4, N_pad), points.dtype).at[:, :, :N].set(points)
    else:
        pts = points
    NR = N_pad // 128
    pts = pts.reshape(B, 4, NR, 128)

    TR = _pick_tile_rows(NR, tile_rows, min_blocks=max(1, 8 // B))
    nt = _cdiv(NR, TR)  # partial last block allowed; OOB rows are masked off

    kernel = functools.partial(
        _project3d_kernel,
        inv_w=1.0 / (width - 1),
        inv_h=1.0 / (height - 1),
        eps=eps,
    )

    out = pl.pallas_call(
        kernel,
        out_shape=jax.ShapeDtypeStruct((B, 2, NR, 128), jnp.float32),
        grid_spec=pltpu.PrefetchScalarGridSpec(
            num_scalar_prefetch=1,          # P_flat -> SMEM once, before grid
            grid=(B, nt),
            in_specs=[
                pl.BlockSpec((1, 4, TR, 128), lambda b, j, p: (b, 0, j, 0)),
            ],
            out_specs=pl.BlockSpec((1, 2, TR, 128), lambda b, j, p: (b, 0, j, 0)),
        ),
        compiler_params=pltpu.CompilerParams(
            dimension_semantics=("parallel", "parallel"),
        ),
    )(P_flat, pts)

    out = out.reshape(B, 2, N_pad)
    if N_pad != N:
        out = out[:, :, :N]
    out = out.reshape(B, 2, height, width)
    if channels_last:
        # PyTorch (B, H, W, 2) layout: one XLA permute.
        out = out.transpose(0, 2, 3, 1)
    return out


def _reference(points, K, T, *, height, width, eps=1e-7):
    """Pure-JAX reference mirroring the PyTorch forward."""
    B = points.shape[0]
    hp = jax.lax.Precision.HIGHEST
    P = jnp.einsum("bij,bjk->bik", K, T[:, :3, :], precision=hp)   # (B, 3, 4)
    cam = jnp.einsum("bij,bjn->bin", P, points, precision=hp)      # (B, 3, N)
    pix = cam[:, :2, :] / (cam[:, 2:3, :] + eps)                   # (B, 2, N)
    pix = pix.reshape(B, 2, height, width).transpose(0, 2, 3, 1)
    pix = pix.at[..., 0].divide(width - 1)
    pix = pix.at[..., 1].divide(height - 1)
    return (pix - 0.5) * 2.0


def _make_inputs(batch, height, width, key):
    N = height * width
    k_xy, k_z, k_t = jax.random.split(key, 3)
    # Homogeneous 3D points: x, y ~ U(-2, 2), z ~ U(1, 5), w = 1.
    xy = jax.random.uniform(k_xy, (batch, 2, N), jnp.float32, -2.0, 2.0)
    z = jax.random.uniform(k_z, (batch, 1, N), jnp.float32, 1.0, 5.0)
    ones = jnp.ones((batch, 1, N), jnp.float32)
    points = jnp.concatenate([xy, z, ones], axis=1)           # (B, 4, N)
    # Camera intrinsics (batched) and extrinsics T = [I | t].
    Kb = jnp.broadcast_to(jnp.asarray(K_NP), (batch, 3, 3)).astype(jnp.float32)
    t = jax.random.uniform(k_t, (batch, 3), jnp.float32, -0.1, 0.1)
    Tb = jnp.broadcast_to(jnp.eye(4, dtype=jnp.float32), (batch, 4, 4))
    Tb = Tb.at[:, :3, 3].set(t)
    return points, Kb, Tb


if __name__ == "__main__":
    key = jax.random.PRNGKey(0)
    k1, k2, k3 = jax.random.split(key, 3)

    # Small case: single spatial block per batch element (NR = 2 < 8).
    batch, height, width = 2, 16, 16
    pts, Kb, Tb = _make_inputs(batch, height, width, k1)
    out = jax.block_until_ready(project3d(pts, Kb, Tb, height=height, width=width))
    ref = _reference(pts, Kb, Tb, height=height, width=width)
    assert out.shape == (batch, height, width, 2)
    np.testing.assert_allclose(np.asarray(out), np.asarray(ref),
                               rtol=1e-5, atol=1e-4)

    # Tiled case: multi-step (B, nt) grid with explicit TR = 8 blocks.
    batch, height, width = 2, 32, 64
    pts, Kb, Tb = _make_inputs(batch, height, width, k2)
    out = jax.block_until_ready(
        project3d(pts, Kb, Tb, height=height, width=width, tile_rows=8))
    ref = _reference(pts, Kb, Tb, height=height, width=width)
    assert out.shape == (batch, height, width, 2)
    np.testing.assert_allclose(np.asarray(out), np.asarray(ref),
                               rtol=1e-5, atol=1e-4)

    # B = 1, N not a multiple of 128: exercises the pad + slice path.
    batch, height, width = 1, 24, 40
    pts, Kb, Tb = _make_inputs(batch, height, width, k3)
    out = jax.block_until_ready(project3d(pts, Kb, Tb, height=height, width=width))
    ref = _reference(pts, Kb, Tb, height=height, width=width)
    assert out.shape == (batch, height, width, 2)
    np.testing.assert_allclose(np.asarray(out), np.asarray(ref),
                               rtol=1e-5, atol=1e-4)

    print("KERNEL_OK")
</pallas_src>

<mosaic_0001>
module attributes {stable_mosaic.version = 11 : i64} {
  func.func @_project3d_kernel(%arg0: i32, %arg1: i32, %arg2: memref<2x12xf32, #tpu.memory_space<smem>>, %arg3: memref<1x4x2x128xf32, #tpu.memory_space<vmem>>, %arg4: memref<1x2x2x128xf32, #tpu.memory_space<vmem>>) attributes {dimension_semantics = [#tpu.dimension_semantics<parallel>, #tpu.dimension_semantics<parallel>], iteration_bounds = array<i64: 2, 1>, scalar_prefetch = 1 : i64, scratch_operands = 0 : i64, tpu.core_type = #tpu.core_type<tc>, window_params = [{transform_indices = @transform_0, window_bounds = array<i64: 1, 4, 2, 128>}, {transform_indices = @transform_1, window_bounds = array<i64: 1, 2, 2, 128>}]} {
    %c0 = arith.constant 0 : index
    %c0_0 = arith.constant 0 : index
    %c0_1 = arith.constant 0 : index
    %c0_2 = arith.constant 0 : index
    %0 = vector.load %arg3[%c0, %c0_0, %c0_1, %c0_2] : memref<1x4x2x128xf32, #tpu.memory_space<vmem>>, vector<1x1x2x128xf32>
    %1 = vector.shape_cast %0 : vector<1x1x2x128xf32> to vector<2x128xf32>
    %c0_3 = arith.constant 0 : index
    %c1 = arith.constant 1 : index
    %c0_4 = arith.constant 0 : index
    %c0_5 = arith.constant 0 : index
    %2 = vector.load %arg3[%c0_3, %c1, %c0_4, %c0_5] : memref<1x4x2x128xf32, #tpu.memory_space<vmem>>, vector<1x1x2x128xf32>
    %3 = vector.shape_cast %2 : vector<1x1x2x128xf32> to vector<2x128xf32>
    %c0_6 = arith.constant 0 : index
    %c2 = arith.constant 2 : index
    %c0_7 = arith.constant 0 : index
    %c0_8 = arith.constant 0 : index
    %4 = vector.load %arg3[%c0_6, %c2, %c0_7, %c0_8] : memref<1x4x2x128xf32, #tpu.memory_space<vmem>>, vector<1x1x2x128xf32>
    %5 = vector.shape_cast %4 : vector<1x1x2x128xf32> to vector<2x128xf32>
    %c0_9 = arith.constant 0 : index
    %c3 = arith.constant 3 : index
    %c0_10 = arith.constant 0 : index
    %c0_11 = arith.constant 0 : index
    %6 = vector.load %arg3[%c0_9, %c3, %c0_10, %c0_11] : memref<1x4x2x128xf32, #tpu.memory_space<vmem>>, vector<1x1x2x128xf32>
    %7 = vector.shape_cast %6 : vector<1x1x2x128xf32> to vector<2x128xf32>
    %8 = arith.index_cast %arg0 : i32 to index
    %c0_12 = arith.constant 0 : index
    %9 = memref.load %arg2[%8, %c0_12] : memref<2x12xf32, #tpu.memory_space<smem>>
    %10 = arith.index_cast %arg0 : i32 to index
    %c1_13 = arith.constant 1 : index
    %11 = memref.load %arg2[%10, %c1_13] : memref<2x12xf32, #tpu.memory_space<smem>>
    %12 = arith.index_cast %arg0 : i32 to index
    %c2_14 = arith.constant 2 : index
    %13 = memref.load %arg2[%12, %c2_14] : memref<2x12xf32, #tpu.memory_space<smem>>
    %14 = arith.index_cast %arg0 : i32 to index
    %c3_15 = arith.constant 3 : index
    %15 = memref.load %arg2[%14, %c3_15] : memref<2x12xf32, #tpu.memory_space<smem>>
    %16 = arith.index_cast %arg0 : i32 to index
    %c4 = arith.constant 4 : index
    %17 = memref.load %arg2[%16, %c4] : memref<2x12xf32, #tpu.memory_space<smem>>
    %18 = arith.index_cast %arg0 : i32 to index
    %c5 = arith.constant 5 : index
    %19 = memref.load %arg2[%18, %c5] : memref<2x12xf32, #tpu.memory_space<smem>>
    %20 = arith.index_cast %arg0 : i32 to index
    %c6 = arith.constant 6 : index
    %21 = memref.load %arg2[%20, %c6] : memref<2x12xf32, #tpu.memory_space<smem>>
    %22 = arith.index_cast %arg0 : i32 to index
    %c7 = arith.constant 7 : index
    %23 = memref.load %arg2[%22, %c7] : memref<2x12xf32, #tpu.memory_space<smem>>
    %24 = arith.index_cast %arg0 : i32 to index
    %c8 = arith.constant 8 : index
    %25 = memref.load %arg2[%24, %c8] : memref<2x12xf32, #tpu.memory_space<smem>>
    %26 = arith.index_cast %arg0 : i32 to index
    %c9 = arith.constant 9 : index
    %27 = memref.load %arg2[%26, %c9] : memref<2x12xf32, #tpu.memory_space<smem>>
    %28 = arith.index_cast %arg0 : i32 to index
    %c10 = arith.constant 10 : index
    %29 = memref.load %arg2[%28, %c10] : memref<2x12xf32, #tpu.memory_space<smem>>
    %30 = arith.index_cast %arg0 : i32 to index
    %c11 = arith.constant 11 : index
    %31 = memref.load %arg2[%30, %c11] : memref<2x12xf32, #tpu.memory_space<smem>>
    %32 = vector.broadcast %9 : f32 to vector<2x128xf32>
    %33 = arith.mulf %32, %1 : vector<2x128xf32>
    %34 = vector.broadcast %11 : f32 to vector<2x128xf32>
    %35 = arith.mulf %34, %3 : vector<2x128xf32>
    %36 = arith.addf %33, %35 : vector<2x128xf32>
    %37 = vector.broadcast %13 : f32 to vector<2x128xf32>
    %38 = arith.mulf %37, %5 : vector<2x128xf32>
    %39 = arith.addf %36, %38 : vector<2x128xf32>
    %40 = vector.broadcast %15 : f32 to vector<2x128xf32>
    %41 = arith.mulf %40, %7 : vector<2x128xf32>
    %42 = arith.addf %39, %41 : vector<2x128xf32>
    %43 = vector.broadcast %17 : f32 to vector<2x128xf32>
    %44 = arith.mulf %43, %1 : vector<2x128xf32>
    %45 = vector.broadcast %19 : f32 to vector<2x128xf32>
    %46 = arith.mulf %45, %3 : vector<2x128xf32>
    %47 = arith.addf %44, %46 : vector<2x128xf32>
    %48 = vector.broadcast %21 : f32 to vector<2x128xf32>
    %49 = arith.mulf %48, %5 : vector<2x128xf32>
    %50 = arith.addf %47, %49 : vector<2x128xf32>
    %51 = vector.broadcast %23 : f32 to vector<2x128xf32>
    %52 = arith.mulf %51, %7 : vector<2x128xf32>
    %53 = arith.addf %50, %52 : vector<2x128xf32>
    %54 = vector.broadcast %25 : f32 to vector<2x128xf32>
    %55 = arith.mulf %54, %1 : vector<2x128xf32>
    %56 = vector.broadcast %27 : f32 to vector<2x128xf32>
    %57 = arith.mulf %56, %3 : vector<2x128xf32>
    %58 = arith.addf %55, %57 : vector<2x128xf32>
    %59 = vector.broadcast %29 : f32 to vector<2x128xf32>
    %60 = arith.mulf %59, %5 : vector<2x128xf32>
    %61 = arith.addf %58, %60 : vector<2x128xf32>
    %62 = vector.broadcast %31 : f32 to vector<2x128xf32>
    %63 = arith.mulf %62, %7 : vector<2x128xf32>
    %64 = arith.addf %61, %63 : vector<2x128xf32>
    %cst = arith.constant 1.000000e-07 : f32
    %65 = vector.broadcast %cst : f32 to vector<2x128xf32>
    %66 = arith.addf %64, %65 : vector<2x128xf32>
    %cst_16 = arith.constant 1.000000e+00 : f32
    %67 = vector.broadcast %cst_16 : f32 to vector<2x128xf32>
    %68 = arith.divf %67, %66 : vector<2x128xf32>
    %69 = arith.mulf %42, %68 : vector<2x128xf32>
    %cst_17 = arith.constant 0.0666666701 : f32
    %70 = vector.broadcast %cst_17 : f32 to vector<2x128xf32>
    %71 = arith.mulf %69, %70 : vector<2x128xf32>
    %cst_18 = arith.constant 5.000000e-01 : f32
    %72 = vector.broadcast %cst_18 : f32 to vector<2x128xf32>
    %73 = arith.subf %71, %72 : vector<2x128xf32>
    %cst_19 = arith.constant 2.000000e+00 : f32
    %74 = vector.broadcast %cst_19 : f32 to vector<2x128xf32>
    %75 = arith.mulf %73, %74 : vector<2x128xf32>
    %c0_20 = arith.constant 0 : index
    %c0_21 = arith.constant 0 : index
    %c0_22 = arith.constant 0 : index
    %c0_23 = arith.constant 0 : index
    %76 = vector.load %arg4[%c0_20, %c0_21, %c0_22, %c0_23] : memref<1x2x2x128xf32, #tpu.memory_space<vmem>>, vector<1x1x2x128xf32>
    %77 = vector.shape_cast %76 : vector<1x1x2x128xf32> to vector<2x128xf32>
    %78 = vector.shape_cast %75 : vector<2x128xf32> to vector<1x1x2x128xf32>
    tpu.vector_store %arg4[%c0_20, %c0_21, %c0_22, %c0_23], %78 {strides = array<i32>} : memref<1x2x2x128xf32, #tpu.memory_space<vmem>>, vector<1x1x2x128xf32>,
    %79 = arith.mulf %53, %68 : vector<2x128xf32>
    %cst_24 = arith.constant 0.0666666701 : f32
    %80 = vector.broadcast %cst_24 : f32 to vector<2x128xf32>
    %81 = arith.mulf %79, %80 : vector<2x128xf32>
    %cst_25 = arith.constant 5.000000e-01 : f32
    %82 = vector.broadcast %cst_25 : f32 to vector<2x128xf32>
    %83 = arith.subf %81, %82 : vector<2x128xf32>
    %cst_26 = arith.constant 2.000000e+00 : f32
    %84 = vector.broadcast %cst_26 : f32 to vector<2x128xf32>
    %85 = arith.mulf %83, %84 : vector<2x128xf32>
    %c0_27 = arith.constant 0 : index
    %c1_28 = arith.constant 1 : index
    %c0_29 = arith.constant 0 : index
    %c0_30 = arith.constant 0 : index
    %86 = vector.load %arg4[%c0_27, %c1_28, %c0_29, %c0_30] : memref<1x2x2x128xf32, #tpu.memory_space<vmem>>, vector<1x1x2x128xf32>
    %87 = vector.shape_cast %86 : vector<1x1x2x128xf32> to vector<2x128xf32>
    %88 = vector.shape_cast %85 : vector<2x128xf32> to vector<1x1x2x128xf32>
    tpu.vector_store %arg4[%c0_27, %c1_28, %c0_29, %c0_30], %88 {strides = array<i32>} : memref<1x2x2x128xf32, #tpu.memory_space<vmem>>, vector<1x1x2x128xf32>,
    return
  }
  func.func @transform_0(%arg0: i32, %arg1: i32, %arg2: memref<2x12xf32, #tpu.memory_space<smem>>) -> (i32, i32, i32, i32) {
    %c0_i32 = arith.constant 0 : i32
    %c0_i32_0 = arith.constant 0 : i32
    %c0_i32_1 = arith.constant 0 : i32
    return %arg0, %c0_i32, %arg1, %c0_i32_0 : i32, i32, i32, i32
  }
  func.func @transform_1(%arg0: i32, %arg1: i32, %arg2: memref<2x12xf32, #tpu.memory_space<smem>>) -> (i32, i32, i32, i32) {
    %c0_i32 = arith.constant 0 : i32
    %c0_i32_0 = arith.constant 0 : i32
    %c0_i32_1 = arith.constant 0 : i32
    return %arg0, %c0_i32, %arg1, %c0_i32_0 : i32, i32, i32, i32
  }
}

</mosaic_0001>

<bundles_post_ra>
// kernel: tpu_custom_call.1
= control target key start
LH: loop header
LB: loop body
LE: loop exit
PB: predicated region body
PF: predicated region fallthrough
CT: control target
= control target key end

     0   :  { %s577_s12 = smov [#allocation3]   ;;  %s739_s0 = inlined_call_operand.hbm [shape: f32[2,12], index: 0, kind: input, shape index: {}]   ;;  %s740_s1 = inlined_call_operand.hbm [shape: f32[2,4,2,128], index: 1, kind: input, shape index: {}]   ;;  %s741_s2 = inlined_call_operand.hbm [shape: f32[2,2,2,128], index: 2, kind: output, shape index: {}]  }
   0x1   :  { %s8_s11 = sshll.u32 %s739_s0, 4  ;;  %s9_s11 = int_to_ptr.hbm [resolvable:$true] %s8_s11 }
   0x2   :  { %11 = dma.hbm_to_smem %s9_s11, 32, %s577_s12, [#allocation2] }
   0x3   :  { %543 = dma.done.wait [#allocation2], 32 }
   0x4   :  { %544 = vsyncadd [#allocation2], 4294967264 }
   0x5   :  { %14 = sfence }
   0x6   :  { %15 = vsyncpa [#allocation5], 0 }
   0x7   :  { %17 = vsyncpa [#allocation5 + $0x1], 0 }
   0x8   :  { %18 = vsyncpa [#allocation6], 0 }
   0x9   :  { %20 = vsyncpa [#allocation6 + $0x1], 0  ;;  %s600_s13 = smov 0   ;;  %s602_s14 = smov 0  }
   0xa   :  { %s604_s15 = smov 0   ;;  %s606_s16 = smov 0  }
   0xb   :  { %s608_s17 = smov 0   ;;  %s610_s0 = smov 0  }
   0xc LB: > { %s356_s18 = sadd.s32 4294967295, %s575_s0   ;;  %s357_s19 = sadd.s32 4294967294, %s575_s0   ;;  %s575_s0 = sphi %s610_s0, %s26_s0   ;;  %s571_s17 = sphi %s608_s17, %s750_s17   ;;  %s567_s16 = sphi %s606_s16, %s749_s16   ;;  %s563_s15 = sphi %s604_s15, %s748_s15   ;;  %s559_s14 = sphi %s602_s14, %s747_s14   ;;  %s555_s13 = sphi %s600_s13, %s746_s13  }
   0xd   : > { %s38_s20 = sadd.s32 1, %s571_s17  ;;  %s47_s21 = sadd.s32 1, %s563_s15 }
   0xe   : > { %p40_p0 = scmp.ge.s32.totalorder %s38_s20, 2  ;;  %p54_p1 = scmp.ne.s32.totalorder %s563_s15, %s559_s14 }
   0xf   : > { %p55_p2 = scmp.eq.s32.totalorder %s575_s0, 0  ;;  %p60_p3 = scmp.ne.s32.totalorder %s559_s14, %s555_s13 }
  0x10   : > { %s752_s20 = smov (%p40_p0, %s38_s20), 0  ;;  %p61_p5 = scmp.eq.s32.totalorder %s356_s18, 0 }
  0x11   : > { %p641_p4 = por %p55_p2, %p54_p1  ;;  %s42_s23 = ssub.s32 %s571_s17, %s752_s20 }
  0x12   : > { %p86_p6 = scmp.eq.s32.totalorder %s356_s18, 1  ;;  %p45_p7 = scmp.eq.s32.totalorder %s42_s23, 0 }
  0x13   : > { %p647_p8 = por %p61_p5, %p60_p3  ;;  %p92_p10 = scmp.eq.s32.totalorder %s357_s19, 1 }
  0x14   : > { %p651_p9 = por %p86_p6, %p54_p1  ;;  %p359_p12 = scmp.ge.s32.totalorder %s575_s0, 2 }
  0x15   : > { %s656_s26 = scalar_select %p45_p7, %s563_s15, %s47_s21  }
  0x16   : > { %p658_p11 = por %p92_p10, %p60_p3  ;;  %p392_p13 = scmp.lt.s32.totalorder %s575_s0, 2 }
  0x17   : > { %s112_s28 = sand.u32 1, %s563_s15   ;;  %s378_s30 = sshll.u32 %s571_s17, 3 }
  0x18   : > { %s360_s29 = sshll.u32 %s112_s28, 3  ;;  %s122_s5 = scalar_lea.hbm %s740_s1, %s378_s30 }
  0x19   : > { %s116_s6 = scalar_lea.vmem [#allocation4], %s360_s29  ;;  %s123_s8 = sshll.u32 %s122_s5, 4  ;;  %s124_s8 = int_to_ptr.hbm [resolvable:$true] %s123_s8 }
  0x1a   : > { %s125_s7 = sshll.u32 %s116_s6, 4  ;;  %p385_p0 = pnand %p392_p13, %p641_p4  ;;  %s126_s7 = int_to_ptr.vmem [resolvable:$true] %s125_s7 }
  0x1b   : > { %p363_p1 = scmp.ge.s32.totalorder %s575_s0, 1  ;;  %s113_s9 = scalar_lea.sflag [#allocation5], %s112_s28 }
  0x1c   : > { %s578_s10 = smov 32   ;;  %s579_s11 = smov 2  }
  0x1d   : > { %387 = dma.hbm_to_vmem [thread:$0]  (!%p385_p0), %s124_s8, 128, %s126_s7, %s113_s9, %s578_s10, %s578_s10, %s579_s11  }
  0x1e   : > { %p133_p2 = scmp.lt.s32.totalorder %s575_s0, 3 }
  0x20   : > { %p134_p3 = pnand %p363_p1, %p133_p2 }
  0x21   : > { %s674_s12 = sand.u32 (!%p134_p3), 1, %s559_s14  }
  0x22   : > { %137 = sbr.rel (%p134_p3) target bundleno = 91 (0x5b), region = 24  ;;  %s364_s18 = sshll.u32 (!%p134_p3), %s674_s12, 3 }
  0x23   : > { %s140_s19 = scalar_lea.sflag (!%p134_p3), [#allocation5], %s674_s12  ;;  %s143_s21 = scalar_lea.vmem (!%p134_p3), [#allocation4], %s364_s18 }
  0x27   : > { %546 = dma.done.wait (%p647_p8), %s140_s19, 128  }
  0x28   : > { %548 = vsyncadd (%p647_p8), %s140_s19, 4294967168  ;;  %s683_s22 = sshll.u32 %s567_s16, 7  ;;  %v163_v0 = vld [vmem:[%s143_s21] sm:$0x3]  ;;  %v366_v1 = vld [vmem:[%s143_s21 + $0x2] sm:$0x3] }
  0x29   : > { %s186_s23 = sadd.s32 8, %s683_s22  ;;  %s188_s28 = sadd.s32 9, %s683_s22  ;;  %v367_v3 = vld [vmem:[%s143_s21 + $0x4] sm:$0x3]  ;;  %v368_v5 = vld [vmem:[%s143_s21 + $0x6] sm:$0x3] }
  0x2a   : > { %s187_s29 = sld [smem:[#allocation3 + %s186_s23]]  ;;  %s190_s30 = sadd.s32 10, %s683_s22 }
  0x2b   : > { %s689_s3 = sld [smem:[#allocation3 + %s683_s22]]  ;;  %s192_s4 = sadd.s32 11, %s683_s22 }
  0x2c   : > { %s189_s24 = sld [smem:[#allocation3 + %s188_s28]]  ;;  %s172_s5 = sadd.s32 1, %s683_s22 }
  0x2d   : > { %s191_s6 = sld [smem:[#allocation3 + %s190_s30]]  ;;  %s178_s8 = sadd.s32 4, %s683_s22 }
  0x2e   : > { %s193_s7 = sld [smem:[#allocation3 + %s192_s4]]  ;;  %s180_s9 = sadd.s32 5, %s683_s22 }
  0x2f   : > { %s173_s10 = sld [smem:[#allocation3 + %s172_s5]]  ;;  %s174_s18 = sadd.s32 2, %s683_s22 }
  0x30   : > { %v216_v2 = vstv %s187_s29  ;;  %s179_s11 = sld [smem:[#allocation3 + %s178_s8]]  ;;  %s182_s23 = sadd.s32 6, %s683_s22 }
  0x31   : > { %v217_v4 = vmul.f32 %v216_v2, %v163_v0  ;;  %s181_s19 = sld [smem:[#allocation3 + %s180_s9]]  ;;  %s176_s30 = sadd.s32 3, %s683_s22  ;;  %v194_v14 = vstv %s689_s3 }
  0x32   : > { %v218_v6 = vstv %s189_s24  ;;  %s175_s28 = sld [smem:[#allocation3 + %s174_s18]]  ;;  %s184_s4 = sadd.s32 7, %s683_s22  ;;  %v195_v20 = vmul.f32 %v194_v14, %v163_v0 }
  0x33   : > { %v219_v7 = vmul.f32 %v366_v1, %v218_v6  ;;  %v221_v8 = vstv %s191_s6  ;;  %s183_s29 = sld [smem:[#allocation3 + %s182_s23]]  ;;  %s365_s22 = sshll.u32 %s674_s12, 2 }
  0x34   : > { %v222_v9 = vmul.f32 %v367_v3, %v221_v8  ;;  %v224_v10 = vstv %s193_s7  ;;  %s177_s5 = sld [smem:[#allocation3 + %s176_s30]]  ;;  %s379_s3 = sshll.u32 %s567_s16, 2 }
  0x35   : > { %v220_v11 = vadd.f32 %v219_v7, %v217_v4  ;;  %v225_v12 = vmul.f32 %v368_v5, %v224_v10  ;;  %v196_v15 = vstv %s173_s10  ;;  %s185_s21 = sld [smem:[#allocation3 + %s184_s4]]  ;;  %s267_s7 = scalar_lea.hbm %s741_s2, %s379_s3 }
  0x36   : > { %v205_v17 = vstv %s179_s11  ;;  %v197_v21 = vmul.f32 %v366_v1, %v196_v15  ;;  %s162_s8 = scalar_lea.vmem [#allocation7], %s365_s22  ;;  %s270_s10 = sshll.u32 %s267_s7, 4  ;;  %s271_s10 = int_to_ptr.hbm [resolvable:$true] %s270_s10 }
  0x37   : > { %v223_v13 = vadd.f32 %v222_v9, %v220_v11  ;;  %v207_v18 = vstv %s181_s19  ;;  %v206_v23 = vmul.f32 %v205_v17, %v163_v0  ;;  %s268_s9 = sshll.u32 %s162_s8, 4  ;;  %s255_s16 = scalar_lea.sflag [#allocation6], %s674_s12  ;;  %s269_s9 = int_to_ptr.vmem [resolvable:$true] %s268_s9 }
  0x38   : > { %v199_v22 = vstv %s175_s28  ;;  %v208_v24 = vmul.f32 %v366_v1, %v207_v18  ;;  %v198_v27 = vadd.f32 %v197_v21, %v195_v20  ;;  %s505_s11 = sshra.s32 %s271_s10, 4  ;;  %s511_s28 = scalar_lea.hbm %s741_s2, 8  ;;  %s506_s11 = int_to_ptr.hbm [resolvable:$true] %s505_s11 }
  0x39   : > { %v226_v16 = vadd.f32 %v225_v12, %v223_v13  ;;  %v210_v25 = vstv %s183_s29  ;;  %v200_v26 = vmul.f32 %v367_v3, %v199_v22  ;;  %s507_s18 = scalar_lea.hbm %s506_s11, 4  ;;  %p512_p7 = scmp.lt.s32.totalorder %s506_s11, %s741_s2 }
  0x3a   : > { %v202_v28 = vstv %s177_s5  ;;  %v209_v29 = vadd.f32 %v208_v24, %v206_v23  ;;  %v211_v30 = vmul.f32 %v367_v3, %v210_v25  ;;  %p508_p4 = scmp.ne.s32.totalorder %s506_s11, %s507_s18  ;;  %p513_p8 = scmp.lt.s32.totalorder %s511_s28, %s507_s18 }
  0x3b   : > { %v227_v19 = vadd.f32 1e-07, %v226_v16  ;;  %v213_v31 = vstv %s185_s21  ;;  %v203_v33 = vmul.f32 %v368_v5, %v202_v28  ;;  %v201_v35 = vadd.f32 %v200_v26, %v198_v27 }
  0x3c   : > { %v212_v37 = vadd.f32 %v211_v30, %v209_v29  ;;  %v214_v38 = vmul.f32 %v368_v5, %v213_v31  ;;  %p509_p5 = pnand %p508_p4, %p651_p9  ;;  %p514_p10 = por %p513_p8, %p512_p7 }
  0x3d   : > { %447 = vrcp.f32 %v227_v19  ;;  %v239_v36 = vand.u32 2147483648, %v227_v19  ;;  %vm233_vm0 = vweird.f32 %v227_v19  ;;  %v237_v40 = vand.u32 2147483647, %v227_v19 }
  0x3e   : > { %v204_v43 = vadd.f32 %v203_v33, %v201_v35  ;;  %v215_v45 = vadd.f32 %v214_v38, %v212_v37  ;;  %p510_p6 = pneg %p509_p5 }
  0x3f   : > { %v240_v42 = vor.u32 1.1754944e-38, %v239_v36  ;;  %vm238_vm3 = vcmp.eq.f32.partialorder %v237_v40, 8.507059e+37 }
  0x40   : > { %p515_p13 = pnand %p514_p10, %p510_p6 }
  0x43   : > { %v448_v32 = vpop.eup %447 }
  0x44   : > { %v229_v34 = vmul.f32 %v448_v32, %v227_v19  ;;  %vm234_vm1 = vweird.f32 %v448_v32 }
  0x45   : > { %vm235_vm2 = vmor %vm233_vm0, %vm234_vm1 }
  0x46   : > { %v230_v39 = vsub.f32 1.0, %v229_v34 }
  0x48   : > { %v231_v41 = vmul.f32 %v448_v32, %v230_v39 }
  0x4a   : > { %v232_v44 = vadd.f32 %v448_v32, %v231_v41 }
  0x4c   : > { %v236_v46 = vsel %vm235_vm2, %v448_v32, %v232_v44 }
  0x4d   : > { %v241_v47 = vsel %vm238_vm3, %v240_v42, %v236_v46 }
  0x4e   : > { %v243_v48 = vmul.f32 %v241_v47, %v204_v43  ;;  %v248_v49 = vmul.f32 %v241_v47, %v215_v45 }
  0x50   : > { %v244_v50 = vmul.f32 0.06666667, %v243_v48  ;;  %v249_v51 = vmul.f32 0.06666667, %v248_v49 }
  0x52   : > { %v370_v52 = vadd.f32 -0.5, %v244_v50  ;;  %v371_v53 = vadd.f32 -0.5, %v249_v51 }
  0x54   : > { %v246_v54 = vmul.f32 2.0, %v370_v52  ;;  %v251_v55 = vmul.f32 2.0, %v371_v53 }
  0x56   : > { %247 = vst [vmem:[%s162_s8] sm:$0x3] %v246_v54 }
  0x57   : > { %372 = vst [vmem:[%s162_s8 + $0x2] sm:$0x3] %v251_v55 }
  0x58   : > { %518 = shalt.err (!%p515_p13)
}
  0x59   : > { %s580_s12 = smov 32   ;;  %s581_s4 = smov 2  }
  0x5a   : > { %382 = dma.vmem_to_hbm [thread:$0]  (%p651_p9), %s269_s9, 64, %s271_s10, %s255_s16, %s580_s12, %s580_s12, %s581_s4  }
  0x5b PF: > { %s285_s5 = sand.u32 1, %s555_s13   ;;  %p389_p0 = pnand %p359_p12, %p658_p11 }
  0x5c   : > { %s286_s21 = scalar_lea.sflag [#allocation6], %s285_s5 }
  0x5d   : > { %p390_p1 = pneg %p389_p0 }
  0x5f   : > { %550 = dma.done.wait (%p390_p1), %s286_s21, 64  }
  0x60   : > { %552 = vsyncadd (%p390_p1), %s286_s21, 4294967232  ;;  %s26_s0 = sadd.s32 1, %s575_s0   ;;  %s746_s13 = smov %s559_s14 }
  0x61   : > { %p23_p2 = scmp.ge.s32.totalorder %s26_s0, 4   ;;  %s747_s14 = smov %s563_s15 }
  0x62   : > { %s748_s15 = smov %s656_s26  ;;  %s749_s16 = smov %s571_s17 }
  0x63   : > { %s750_s17 = smov %s752_s20  ;;  %25 = sbr.rel (!%p23_p2) target bundleno = 12 (0xc), region = 73 }
  0x68   :  { %292 = vsyncpa [#allocation5], 1 }
  0x69   :  { %294 = vsyncpa [#allocation5 + $0x1], 1 }
  0x6a   :  { %295 = vsyncpa [#allocation6], 1 }
  0x6b   :  { %297 = vsyncpa [#allocation6 + $0x1], 1 }

</bundles_post_ra>
